<compile_context>
chip_gen: v6e
topology: v6e:2x2x1
jax: 0.10.0
libtpu: 0.0.40
codegen_flags: <defaults>
</compile_context>

<pallas_src>
import jax
import jax.numpy as jnp
from jax.experimental import pallas as pl
from jax.experimental.pallas import tpu as pltpu


def _round_up(x, m):
    return (x + m - 1) // m * m


def _decode_step_kernel(tf_ref,      # SMEM (T,) int32  teacher-forcing flags (scalar prefetch)
                        trg_ref,     # (1, Bp, 1) int32 trg row for this step
                        h0_ref,      # (Bp, H)  f32     initial decoder hidden
                        emb_ref,     # (Vp, E)  bf16    embedding table (vocab-padded)
                        wih_ref,     # (3, E, H) bf16   GRU input weights  [r|z|n]
                        whh_ref,     # (3, H, H) bf16   GRU hidden weights [r|z|n]
                        bih_ref,     # (3, 1, H) f32
                        bhh_ref,     # (3, 1, H) f32
                        wout_ref,    # (H, Vp)  bf16    output projection (vocab-padded)
                        bout_ref,    # (1, Vp)  f32     bias (-1e30 on padded cols)
                        logp_ref,    # out (1, Bp, Vp) f32  log-probs for this step
                        hfin_ref,    # out (Bp, H) f32  resident hidden-state carrier
                        tok_ref):    # scratch (Bp, 1) int32  previous-step argmax
    i = pl.program_id(0)
    Bp, H = hfin_ref.shape
    Vp = logp_ref.shape[-1]
    cdt = emb_ref.dtype  # compute dtype for MXU (bf16)

    # Seed the resident hidden-state carrier once.
    @pl.when(i == 0)
    def _():
        hfin_ref[...] = h0_ref[...]

    # ---- choose this step's input token -------------------------------------
    #   step 0            -> trg[0]
    #   step i>0, teacher -> trg[i]
    #   step i>0, else    -> argmax of previous step's logits (tok_ref)
    trg_row = trg_ref[0]                                   # (Bp, 1) int32
    use_trg = jnp.logical_or(i == 0, tf_ref[i] != 0)
    cur_tok = jnp.where(use_trg, trg_row, tok_ref[...])    # (Bp, 1) int32

    # ---- embedding lookup as a one-hot matmul (no gather) --------------------
    lane_ids = jax.lax.broadcasted_iota(jnp.int32, (Bp, Vp), 1)
    onehot = (lane_ids == cur_tok).astype(cdt)             # (Bp, Vp)
    x = jnp.dot(onehot, emb_ref[...], preferred_element_type=jnp.float32)  # (Bp, E) f32
    # TODO(synk): dropout(p=0.2) identity (eval mode).

    # ---- GRU cell (PyTorch gate order r, z, n), lane-aligned gate blocks -----
    h = hfin_ref[...]                                      # (Bp, H) f32
    xb = x.astype(cdt)
    hb = h.astype(cdt)

    def gate(k):
        gi = jnp.dot(xb, wih_ref[k], preferred_element_type=jnp.float32) + bih_ref[k]
        gh = jnp.dot(hb, whh_ref[k], preferred_element_type=jnp.float32) + bhh_ref[k]
        return gi, gh

    i_r, h_r = gate(0)
    i_z, h_z = gate(1)
    i_n, h_n = gate(2)
    r = jax.nn.sigmoid(i_r + h_r)
    z = jax.nn.sigmoid(i_z + h_z)
    n = jnp.tanh(i_n + r * h_n)
    h_new = (1.0 - z) * n + z * h
    hfin_ref[...] = h_new                                  # carried to next step

    # ---- output projection + log_softmax (padded cols carry -1e30 bias) ------
    logits = jnp.dot(h_new.astype(cdt), wout_ref[...],
                     preferred_element_type=jnp.float32) + bout_ref[...]   # (Bp, Vp)
    m = jnp.max(logits, axis=-1, keepdims=True)
    shifted = logits - m
    lse = jnp.log(jnp.sum(jnp.exp(shifted), axis=-1, keepdims=True))
    logp_ref[0] = shifted - lse

    # ---- greedy token for the next step (first max index, torch-style) -------
    is_max = logits == m
    idx = jnp.min(jnp.where(is_max, lane_ids.astype(jnp.float32), float(Vp)),
                  axis=-1, keepdims=True)
    tok_ref[...] = idx.astype(jnp.int32)


def init_params(key, embed_size, hidden_size, output_size):
    """Raw parameters in PyTorch layout (as nn.Embedding / nn.GRU / nn.Linear)."""
    ks = jax.random.split(key, 7)
    s = 0.1
    return {
        "embed": s * jax.random.normal(ks[0], (output_size, embed_size), jnp.float32),
        "W_ih":  s * jax.random.normal(ks[1], (3 * hidden_size, embed_size), jnp.float32),
        "W_hh":  s * jax.random.normal(ks[2], (3 * hidden_size, hidden_size), jnp.float32),
        "b_ih":  s * jax.random.normal(ks[3], (3 * hidden_size,), jnp.float32),
        "b_hh":  s * jax.random.normal(ks[4], (3 * hidden_size,), jnp.float32),
        "W_out": s * jax.random.normal(ks[5], (output_size, hidden_size), jnp.float32),
        "b_out": s * jax.random.normal(ks[6], (output_size,), jnp.float32),
    }


def prepare_seq2seq_params(raw, compute_dtype=jnp.bfloat16):
    """One-time weight prep: transpose, split GRU gates, pad vocab to 128 lanes, cast."""
    V, E = raw["embed"].shape
    H = raw["W_hh"].shape[1]
    Vp = _round_up(V, 128)

    emb = jnp.zeros((Vp, E), compute_dtype).at[:V].set(raw["embed"].astype(compute_dtype))

    def split_w(w):  # (3H, X) -> (3, X, H), per-gate transposed
        return jnp.stack([w[k * H:(k + 1) * H, :].T for k in range(3)], 0).astype(compute_dtype)

    def split_b(b):  # (3H,) -> (3, 1, H) f32
        return jnp.stack([b[k * H:(k + 1) * H][None, :] for k in range(3)], 0).astype(jnp.float32)

    w_out = jnp.zeros((H, Vp), compute_dtype).at[:, :V].set(raw["W_out"].T.astype(compute_dtype))
    b_out = jnp.full((1, Vp), -1e30, jnp.float32).at[0, :V].set(raw["b_out"].astype(jnp.float32))

    return {
        "embed": emb,
        "w_ih": split_w(raw["W_ih"]), "w_hh": split_w(raw["W_hh"]),
        "b_ih": split_b(raw["b_ih"]), "b_hh": split_b(raw["b_hh"]),
        "w_out": w_out, "b_out": b_out,
        "E": E, "H": H, "V": V, "Vp": Vp,
    }


def seq2seq_decode(trg, dec_hidden, encoder_outputs, prep, teacher_flags):
    """Run the Seq2Seq decode loop in one Pallas kernel.

    trg:            (max_len, B) int32 target tokens (trg[0] is the start token).
    dec_hidden:     (1, B, H) f32 initial decoder hidden (from the encoder).
    encoder_outputs: unused (non-attention decoder).
    teacher_flags:  (max_len,) int32; flag[t] chooses teacher forcing for step t+1.
    Returns (outputs (max_len, B, V) log-probs with outputs[0]=0, hidden (1, B, H)).
    """
    del encoder_outputs  # TODO(synk): non-attention DecoderRNN; not used by the forward.
    T, B = trg.shape
    H, V, Vp = prep["H"], prep["V"], prep["Vp"]
    Bp = max(8, _round_up(B, 8))
    steps = T - 1

    # Sublane-pad batch; tokens as (T, Bp, 1) so per-step rows load as (Bp, 1).
    trg_p = jnp.zeros((T, Bp, 1), jnp.int32).at[:, :B, 0].set(trg)
    h0_p = jnp.zeros((Bp, H), jnp.float32).at[:B].set(dec_hidden[0].astype(jnp.float32))

    def const(a):  # full-array block, constant index -> resident in VMEM across steps
        return pl.BlockSpec(tuple(a.shape), lambda i, tf, _n=a.ndim: (0,) * _n)

    grid_spec = pltpu.PrefetchScalarGridSpec(
        num_scalar_prefetch=1,            # teacher_flags -> SMEM
        grid=(steps,),
        in_specs=[
            pl.BlockSpec((1, Bp, 1), lambda i, tf: (i, 0, 0)),   # trg[i]
            const(h0_p),
            const(prep["embed"]),
            const(prep["w_ih"]), const(prep["w_hh"]),
            const(prep["b_ih"]), const(prep["b_hh"]),
            const(prep["w_out"]), const(prep["b_out"]),
        ],
        out_specs=(
            pl.BlockSpec((1, Bp, Vp), lambda i, tf: (i, 0, 0)),  # per-step log-probs
            pl.BlockSpec((Bp, H), lambda i, tf: (0, 0)),         # resident hidden carrier
        ),
        scratch_shapes=[pltpu.VMEM((Bp, 1), jnp.int32)],         # previous argmax token
    )

    logp_steps, h_final = pl.pallas_call(
        _decode_step_kernel,
        grid_spec=grid_spec,
        out_shape=(
            jax.ShapeDtypeStruct((steps, Bp, Vp), jnp.float32),
            jax.ShapeDtypeStruct((Bp, H), jnp.float32),
        ),
        compiler_params=pltpu.CompilerParams(
            dimension_semantics=("arbitrary",)),  # sequential time dependence
    )(teacher_flags.astype(jnp.int32), trg_p, h0_p, prep["embed"],
      prep["w_ih"], prep["w_hh"], prep["b_ih"], prep["b_hh"],
      prep["w_out"], prep["b_out"])

    # Unpad and prepend the zero row (outputs[0] in the reference loop).
    outputs = jnp.concatenate(
        [jnp.zeros((1, B, V), jnp.float32), logp_steps[:, :B, :V]], axis=0)
    hidden = h_final[:B][None, :, :]
    return outputs, hidden


if __name__ == "__main__":
    embed_size, hidden_size, output_size = 32, 32, 64
    batch, max_len = 2, 8

    key = jax.random.PRNGKey(0)
    kp, kt, kh, ke, kf = jax.random.split(key, 5)
    raw_params = init_params(kp, embed_size, hidden_size, output_size)
    prep = prepare_seq2seq_params(raw_params)          # one-time weight prep

    trg = jax.random.randint(kt, (max_len, batch), 0, output_size, dtype=jnp.int32)
    dec_hidden = 0.1 * jax.random.normal(kh, (1, batch, hidden_size), jnp.float32)
    encoder_outputs = jax.random.normal(ke, (max_len, batch, hidden_size), jnp.float32)  # unused
    # random.random() < teacher_forcing_ratio, precomputed deterministically.
    teacher_flags = jax.random.bernoulli(kf, 0.5, (max_len,)).astype(jnp.int32)

    outputs, hidden = seq2seq_decode(trg, dec_hidden, encoder_outputs, prep, teacher_flags)
    jax.block_until_ready((outputs, hidden))

    assert outputs.shape == (max_len, batch, output_size)
    assert hidden.shape == (1, batch, hidden_size)
    assert bool(jnp.all(outputs[0] == 0.0))
    # log_softmax rows (t >= 1) must sum to ~1 in probability space.
    assert jnp.allclose(jnp.sum(jnp.exp(outputs[1:]), axis=-1), 1.0, atol=1e-4)
    assert bool(jnp.all(jnp.isfinite(hidden)))
    print("KERNEL_OK")
</pallas_src>

<mosaic_0001>
module attributes {stable_mosaic.version = 11 : i64} {
  func.func @_decode_step_kernel(%arg0: i32, %arg1: memref<8xi32, #tpu.memory_space<smem>>, %arg2: memref<1x8x1xi32, #tpu.memory_space<vmem>>, %arg3: memref<8x32xf32, #tpu.memory_space<vmem>>, %arg4: memref<128x32xbf16, #tpu.memory_space<vmem>>, %arg5: memref<3x32x32xbf16, #tpu.memory_space<vmem>>, %arg6: memref<3x32x32xbf16, #tpu.memory_space<vmem>>, %arg7: memref<3x1x32xf32, #tpu.memory_space<vmem>>, %arg8: memref<3x1x32xf32, #tpu.memory_space<vmem>>, %arg9: memref<32x128xbf16, #tpu.memory_space<vmem>>, %arg10: memref<1x128xf32, #tpu.memory_space<vmem>>, %arg11: memref<1x8x128xf32, #tpu.memory_space<vmem>>, %arg12: memref<8x32xf32, #tpu.memory_space<vmem>>, %arg13: memref<8x1xi32, #tpu.memory_space<vmem>>) attributes {dimension_semantics = [#tpu.dimension_semantics<arbitrary>], iteration_bounds = array<i64: 7>, scalar_prefetch = 1 : i64, scratch_operands = 1 : i64, tpu.core_type = #tpu.core_type<tc>, window_params = [{transform_indices = @transform_0, window_bounds = array<i64: 1, 8, 1>}, {pipeline_mode = #tpu.pipeline_mode<synchronous>, transform_indices = @transform_1, window_bounds = array<i64: 8, 32>}, {pipeline_mode = #tpu.pipeline_mode<synchronous>, transform_indices = @transform_2, window_bounds = array<i64: 128, 32>}, {pipeline_mode = #tpu.pipeline_mode<synchronous>, transform_indices = @transform_3, window_bounds = array<i64: 3, 32, 32>}, {pipeline_mode = #tpu.pipeline_mode<synchronous>, transform_indices = @transform_4, window_bounds = array<i64: 3, 32, 32>}, {pipeline_mode = #tpu.pipeline_mode<synchronous>, transform_indices = @transform_5, window_bounds = array<i64: 3, 1, 32>}, {pipeline_mode = #tpu.pipeline_mode<synchronous>, transform_indices = @transform_6, window_bounds = array<i64: 3, 1, 32>}, {pipeline_mode = #tpu.pipeline_mode<synchronous>, transform_indices = @transform_7, window_bounds = array<i64: 32, 128>}, {pipeline_mode = #tpu.pipeline_mode<synchronous>, transform_indices = @transform_8, window_bounds = array<i64: 1, 128>}, {transform_indices = @transform_9, window_bounds = array<i64: 1, 8, 128>}, {pipeline_mode = #tpu.pipeline_mode<synchronous>, transform_indices = @transform_10, window_bounds = array<i64: 8, 32>}]} {
    %c0_i32 = arith.constant 0 : i32
    %0 = arith.cmpi eq, %arg0, %c0_i32 : i32
    %1 = arith.extui %0 : i1 to i32
    %c0_i32_0 = arith.constant 0 : i32
    %2 = arith.cmpi ne, %1, %c0_i32_0 : i32
    scf.if %2 {
      %c0_70 = arith.constant 0 : index
      %c0_71 = arith.constant 0 : index
      %114 = vector.load %arg3[%c0_70, %c0_71] : memref<8x32xf32, #tpu.memory_space<vmem>>, vector<8x32xf32>
      %c0_72 = arith.constant 0 : index
      %c0_73 = arith.constant 0 : index
      %115 = vector.load %arg12[%c0_72, %c0_73] : memref<8x32xf32, #tpu.memory_space<vmem>>, vector<8x32xf32>
      tpu.vector_store %arg12[%c0_72, %c0_73], %114 {strides = array<i32>} : memref<8x32xf32, #tpu.memory_space<vmem>>, vector<8x32xf32>,
    } else {
    }
    %c0 = arith.constant 0 : index
    %c0_1 = arith.constant 0 : index
    %c0_2 = arith.constant 0 : index
    %3 = vector.load %arg2[%c0, %c0_1, %c0_2] : memref<1x8x1xi32, #tpu.memory_space<vmem>>, vector<1x8x1xi32>
    %4 = vector.shape_cast %3 : vector<1x8x1xi32> to vector<8x1xi32>
    %c0_i32_3 = arith.constant 0 : i32
    %5 = arith.cmpi eq, %arg0, %c0_i32_3 : i32
    %6 = arith.index_cast %arg0 : i32 to index
    %7 = memref.load %arg1[%6] : memref<8xi32, #tpu.memory_space<smem>>
    %c0_i32_4 = arith.constant 0 : i32
    %8 = arith.cmpi ne, %7, %c0_i32_4 : i32
    %9 = arith.ori %5, %8 : i1
    %c0_5 = arith.constant 0 : index
    %c0_6 = arith.constant 0 : index
    %10 = vector.load %arg13[%c0_5, %c0_6] : memref<8x1xi32, #tpu.memory_space<vmem>>, vector<8x1xi32>
    %11 = arith.select %9, %4, %10 : vector<8x1xi32>
    %12 = tpu.iota {dimensions = array<i32: 1>} : vector<8x128xi32>
    %13 = vector.broadcast %11 : vector<8x1xi32> to vector<8x128xi32>
    %14 = arith.cmpi eq, %12, %13 : vector<8x128xi32>
    %15 = arith.extui %14 : vector<8x128xi1> to vector<8x128xi32>
    %16 = arith.sitofp %15 : vector<8x128xi32> to vector<8x128xf32>
    %17 = arith.truncf %16 : vector<8x128xf32> to vector<8x128xbf16>
    %c0_7 = arith.constant 0 : index
    %c0_8 = arith.constant 0 : index
    %18 = vector.load %arg4[%c0_7, %c0_8] : memref<128x32xbf16, #tpu.memory_space<vmem>>, vector<128x32xbf16>
    %cst = arith.constant dense<0.000000e+00> : vector<8x32xf32>
    %19 = tpu.matmul %17, %18, %cst {dimension_numbers = #tpu.dot_dimension_numbers<[1], [0], [0], [1], [0, 0, 1, 1], [], []>} : vector<8x128xbf16>, vector<128x32xbf16>, vector<8x32xf32> -> vector<8x32xf32>
    %c0_9 = arith.constant 0 : index
    %c0_10 = arith.constant 0 : index
    %20 = vector.load %arg12[%c0_9, %c0_10] : memref<8x32xf32, #tpu.memory_space<vmem>>, vector<8x32xf32>
    %21 = arith.truncf %19 : vector<8x32xf32> to vector<8x32xbf16>
    %22 = arith.truncf %20 : vector<8x32xf32> to vector<8x32xbf16>
    %c0_11 = arith.constant 0 : index
    %c0_12 = arith.constant 0 : index
    %c0_13 = arith.constant 0 : index
    %23 = vector.load %arg5[%c0_11, %c0_12, %c0_13] : memref<3x32x32xbf16, #tpu.memory_space<vmem>>, vector<1x32x32xbf16>
    %24 = vector.shape_cast %23 : vector<1x32x32xbf16> to vector<32x32xbf16>
    %cst_14 = arith.constant dense<0.000000e+00> : vector<8x32xf32>
    %25 = tpu.matmul %21, %24, %cst_14 {dimension_numbers = #tpu.dot_dimension_numbers<[1], [0], [0], [1], [0, 0, 1, 1], [], []>} : vector<8x32xbf16>, vector<32x32xbf16>, vector<8x32xf32> -> vector<8x32xf32>
    %c0_15 = arith.constant 0 : index
    %c0_16 = arith.constant 0 : index
    %c0_17 = arith.constant 0 : index
    %26 = vector.load %arg7[%c0_15, %c0_16, %c0_17] : memref<3x1x32xf32, #tpu.memory_space<vmem>>, vector<1x1x32xf32>
    %27 = vector.shape_cast %26 : vector<1x1x32xf32> to vector<1x32xf32>
    %28 = vector.broadcast %27 : vector<1x32xf32> to vector<8x32xf32>
    %29 = arith.addf %25, %28 : vector<8x32xf32>
    %c0_18 = arith.constant 0 : index
    %c0_19 = arith.constant 0 : index
    %c0_20 = arith.constant 0 : index
    %30 = vector.load %arg6[%c0_18, %c0_19, %c0_20] : memref<3x32x32xbf16, #tpu.memory_space<vmem>>, vector<1x32x32xbf16>
    %31 = vector.shape_cast %30 : vector<1x32x32xbf16> to vector<32x32xbf16>
    %cst_21 = arith.constant dense<0.000000e+00> : vector<8x32xf32>
    %32 = tpu.matmul %22, %31, %cst_21 {dimension_numbers = #tpu.dot_dimension_numbers<[1], [0], [0], [1], [0, 0, 1, 1], [], []>} : vector<8x32xbf16>, vector<32x32xbf16>, vector<8x32xf32> -> vector<8x32xf32>
    %c0_22 = arith.constant 0 : index
    %c0_23 = arith.constant 0 : index
    %c0_24 = arith.constant 0 : index
    %33 = vector.load %arg8[%c0_22, %c0_23, %c0_24] : memref<3x1x32xf32, #tpu.memory_space<vmem>>, vector<1x1x32xf32>
    %34 = vector.shape_cast %33 : vector<1x1x32xf32> to vector<1x32xf32>
    %35 = vector.broadcast %34 : vector<1x32xf32> to vector<8x32xf32>
    %36 = arith.addf %32, %35 : vector<8x32xf32>
    %c1 = arith.constant 1 : index
    %c0_25 = arith.constant 0 : index
    %c0_26 = arith.constant 0 : index
    %37 = vector.load %arg5[%c1, %c0_25, %c0_26] : memref<3x32x32xbf16, #tpu.memory_space<vmem>>, vector<1x32x32xbf16>
    %38 = vector.shape_cast %37 : vector<1x32x32xbf16> to vector<32x32xbf16>
    %cst_27 = arith.constant dense<0.000000e+00> : vector<8x32xf32>
    %39 = tpu.matmul %21, %38, %cst_27 {dimension_numbers = #tpu.dot_dimension_numbers<[1], [0], [0], [1], [0, 0, 1, 1], [], []>} : vector<8x32xbf16>, vector<32x32xbf16>, vector<8x32xf32> -> vector<8x32xf32>
    %c1_28 = arith.constant 1 : index
    %c0_29 = arith.constant 0 : index
    %c0_30 = arith.constant 0 : index
    %40 = vector.load %arg7[%c1_28, %c0_29, %c0_30] : memref<3x1x32xf32, #tpu.memory_space<vmem>>, vector<1x1x32xf32>
    %41 = vector.shape_cast %40 : vector<1x1x32xf32> to vector<1x32xf32>
    %42 = vector.broadcast %41 : vector<1x32xf32> to vector<8x32xf32>
    %43 = arith.addf %39, %42 : vector<8x32xf32>
    %c1_31 = arith.constant 1 : index
    %c0_32 = arith.constant 0 : index
    %c0_33 = arith.constant 0 : index
    %44 = vector.load %arg6[%c1_31, %c0_32, %c0_33] : memref<3x32x32xbf16, #tpu.memory_space<vmem>>, vector<1x32x32xbf16>
    %45 = vector.shape_cast %44 : vector<1x32x32xbf16> to vector<32x32xbf16>
    %cst_34 = arith.constant dense<0.000000e+00> : vector<8x32xf32>
    %46 = tpu.matmul %22, %45, %cst_34 {dimension_numbers = #tpu.dot_dimension_numbers<[1], [0], [0], [1], [0, 0, 1, 1], [], []>} : vector<8x32xbf16>, vector<32x32xbf16>, vector<8x32xf32> -> vector<8x32xf32>
    %c1_35 = arith.constant 1 : index
    %c0_36 = arith.constant 0 : index
    %c0_37 = arith.constant 0 : index
    %47 = vector.load %arg8[%c1_35, %c0_36, %c0_37] : memref<3x1x32xf32, #tpu.memory_space<vmem>>, vector<1x1x32xf32>
    %48 = vector.shape_cast %47 : vector<1x1x32xf32> to vector<1x32xf32>
    %49 = vector.broadcast %48 : vector<1x32xf32> to vector<8x32xf32>
    %50 = arith.addf %46, %49 : vector<8x32xf32>
    %c2 = arith.constant 2 : index
    %c0_38 = arith.constant 0 : index
    %c0_39 = arith.constant 0 : index
    %51 = vector.load %arg5[%c2, %c0_38, %c0_39] : memref<3x32x32xbf16, #tpu.memory_space<vmem>>, vector<1x32x32xbf16>
    %52 = vector.shape_cast %51 : vector<1x32x32xbf16> to vector<32x32xbf16>
    %cst_40 = arith.constant dense<0.000000e+00> : vector<8x32xf32>
    %53 = tpu.matmul %21, %52, %cst_40 {dimension_numbers = #tpu.dot_dimension_numbers<[1], [0], [0], [1], [0, 0, 1, 1], [], []>} : vector<8x32xbf16>, vector<32x32xbf16>, vector<8x32xf32> -> vector<8x32xf32>
    %c2_41 = arith.constant 2 : index
    %c0_42 = arith.constant 0 : index
    %c0_43 = arith.constant 0 : index
    %54 = vector.load %arg7[%c2_41, %c0_42, %c0_43] : memref<3x1x32xf32, #tpu.memory_space<vmem>>, vector<1x1x32xf32>
    %55 = vector.shape_cast %54 : vector<1x1x32xf32> to vector<1x32xf32>
    %56 = vector.broadcast %55 : vector<1x32xf32> to vector<8x32xf32>
    %57 = arith.addf %53, %56 : vector<8x32xf32>
    %c2_44 = arith.constant 2 : index
    %c0_45 = arith.constant 0 : index
    %c0_46 = arith.constant 0 : index
    %58 = vector.load %arg6[%c2_44, %c0_45, %c0_46] : memref<3x32x32xbf16, #tpu.memory_space<vmem>>, vector<1x32x32xbf16>
    %59 = vector.shape_cast %58 : vector<1x32x32xbf16> to vector<32x32xbf16>
    %cst_47 = arith.constant dense<0.000000e+00> : vector<8x32xf32>
    %60 = tpu.matmul %22, %59, %cst_47 {dimension_numbers = #tpu.dot_dimension_numbers<[1], [0], [0], [1], [0, 0, 1, 1], [], []>} : vector<8x32xbf16>, vector<32x32xbf16>, vector<8x32xf32> -> vector<8x32xf32>
    %c2_48 = arith.constant 2 : index
    %c0_49 = arith.constant 0 : index
    %c0_50 = arith.constant 0 : index
    %61 = vector.load %arg8[%c2_48, %c0_49, %c0_50] : memref<3x1x32xf32, #tpu.memory_space<vmem>>, vector<1x1x32xf32>
    %62 = vector.shape_cast %61 : vector<1x1x32xf32> to vector<1x32xf32>
    %63 = vector.broadcast %62 : vector<1x32xf32> to vector<8x32xf32>
    %64 = arith.addf %60, %63 : vector<8x32xf32>
    %65 = arith.addf %29, %36 : vector<8x32xf32>
    %66 = arith.negf %65 : vector<8x32xf32>
    %67 = math.exp %66 : vector<8x32xf32>
    %cst_51 = arith.constant 1.000000e+00 : f32
    %68 = vector.broadcast %cst_51 : f32 to vector<8x32xf32>
    %69 = arith.addf %68, %67 : vector<8x32xf32>
    %70 = arith.divf %68, %69 : vector<8x32xf32>
    %71 = arith.addf %43, %50 : vector<8x32xf32>
    %72 = arith.negf %71 : vector<8x32xf32>
    %73 = math.exp %72 : vector<8x32xf32>
    %cst_52 = arith.constant 1.000000e+00 : f32
    %74 = vector.broadcast %cst_52 : f32 to vector<8x32xf32>
    %75 = arith.addf %74, %73 : vector<8x32xf32>
    %76 = arith.divf %74, %75 : vector<8x32xf32>
    %77 = arith.mulf %70, %64 : vector<8x32xf32>
    %78 = arith.addf %57, %77 : vector<8x32xf32>
    %79 = math.tanh %78 : vector<8x32xf32>
    %cst_53 = arith.constant 1.000000e+00 : f32
    %80 = vector.broadcast %cst_53 : f32 to vector<8x32xf32>
    %81 = arith.subf %80, %76 : vector<8x32xf32>
    %82 = arith.mulf %81, %79 : vector<8x32xf32>
    %83 = arith.mulf %76, %20 : vector<8x32xf32>
    %84 = arith.addf %82, %83 : vector<8x32xf32>
    %c0_54 = arith.constant 0 : index
    %c0_55 = arith.constant 0 : index
    %85 = vector.load %arg12[%c0_54, %c0_55] : memref<8x32xf32, #tpu.memory_space<vmem>>, vector<8x32xf32>
    tpu.vector_store %arg12[%c0_54, %c0_55], %84 {strides = array<i32>} : memref<8x32xf32, #tpu.memory_space<vmem>>, vector<8x32xf32>,
    %86 = arith.truncf %84 : vector<8x32xf32> to vector<8x32xbf16>
    %c0_56 = arith.constant 0 : index
    %c0_57 = arith.constant 0 : index
    %87 = vector.load %arg9[%c0_56, %c0_57] : memref<32x128xbf16, #tpu.memory_space<vmem>>, vector<32x128xbf16>
    %cst_58 = arith.constant dense<0.000000e+00> : vector<8x128xf32>
    %88 = tpu.matmul %86, %87, %cst_58 {dimension_numbers = #tpu.dot_dimension_numbers<[1], [0], [0], [1], [0, 0, 1, 1], [], []>} : vector<8x32xbf16>, vector<32x128xbf16>, vector<8x128xf32> -> vector<8x128xf32>
    %c0_59 = arith.constant 0 : index
    %c0_60 = arith.constant 0 : index
    %89 = vector.load %arg10[%c0_59, %c0_60] : memref<1x128xf32, #tpu.memory_space<vmem>>, vector<1x128xf32>
    %90 = vector.broadcast %89 : vector<1x128xf32> to vector<8x128xf32>
    %91 = arith.addf %88, %90 : vector<8x128xf32>
    %cst_61 = arith.constant dense<0xFF800000> : vector<8xf32>
    %92 = vector.multi_reduction <maximumf>, %91, %cst_61 [1] : vector<8x128xf32> to vector<8xf32>
    %93 = vector.shape_cast %92 : vector<8xf32> to vector<8x1xf32>
    %94 = vector.broadcast %93 : vector<8x1xf32> to vector<8x128xf32>
    %95 = arith.subf %91, %94 : vector<8x128xf32>
    %96 = math.exp %95 : vector<8x128xf32>
    %cst_62 = arith.constant dense<0.000000e+00> : vector<8xf32>
    %97 = vector.multi_reduction <add>, %96, %cst_62 [1] : vector<8x128xf32> to vector<8xf32>
    %98 = vector.shape_cast %97 : vector<8xf32> to vector<8x1xf32>
    %99 = math.log %98 : vector<8x1xf32>
    %100 = vector.broadcast %99 : vector<8x1xf32> to vector<8x128xf32>
    %101 = arith.subf %95, %100 : vector<8x128xf32>
    %c0_63 = arith.constant 0 : index
    %c0_64 = arith.constant 0 : index
    %c0_65 = arith.constant 0 : index
    %102 = vector.load %arg11[%c0_63, %c0_64, %c0_65] : memref<1x8x128xf32, #tpu.memory_space<vmem>>, vector<1x8x128xf32>
    %103 = vector.shape_cast %102 : vector<1x8x128xf32> to vector<8x128xf32>
    %104 = vector.shape_cast %101 : vector<8x128xf32> to vector<1x8x128xf32>
    tpu.vector_store %arg11[%c0_63, %c0_64, %c0_65], %104 {strides = array<i32>} : memref<1x8x128xf32, #tpu.memory_space<vmem>>, vector<1x8x128xf32>,
    %105 = vector.broadcast %93 : vector<8x1xf32> to vector<8x128xf32>
    %106 = arith.cmpf oeq, %91, %105 : vector<8x128xf32>
    %107 = arith.sitofp %12 : vector<8x128xi32> to vector<8x128xf32>
    %cst_66 = arith.constant 1.280000e+02 : f32
    %108 = vector.broadcast %cst_66 : f32 to vector<8x128xf32>
    %109 = arith.select %106, %107, %108 : vector<8x128xi1>, vector<8x128xf32>
    %cst_67 = arith.constant dense<0x7F800000> : vector<8xf32>
    %110 = vector.multi_reduction <minimumf>, %109, %cst_67 [1] : vector<8x128xf32> to vector<8xf32>
    %111 = vector.shape_cast %110 : vector<8xf32> to vector<8x1xf32>
    %112 = arith.fptosi %111 : vector<8x1xf32> to vector<8x1xi32>
    %c0_68 = arith.constant 0 : index
    %c0_69 = arith.constant 0 : index
    %113 = vector.load %arg13[%c0_68, %c0_69] : memref<8x1xi32, #tpu.memory_space<vmem>>, vector<8x1xi32>
    tpu.vector_store %arg13[%c0_68, %c0_69], %112 {strides = array<i32>} : memref<8x1xi32, #tpu.memory_space<vmem>>, vector<8x1xi32>,
    return
  }
  func.func @transform_0(%arg0: i32, %arg1: memref<8xi32, #tpu.memory_space<smem>>) -> (i32, i32, i32) {
    %c0_i32 = arith.constant 0 : i32
    %c0_i32_0 = arith.constant 0 : i32
    %c0_i32_1 = arith.constant 0 : i32
    return %arg0, %c0_i32, %c0_i32_0 : i32, i32, i32
  }
  func.func @transform_1(%arg0: i32, %arg1: memref<8xi32, #tpu.memory_space<smem>>) -> (i32, i32) {
    %c0_i32 = arith.constant 0 : i32
    %c0_i32_0 = arith.constant 0 : i32
    %c0_i32_1 = arith.constant 0 : i32
    return %c0_i32, %c0_i32_0 : i32, i32
  }
  func.func @transform_2(%arg0: i32, %arg1: memref<8xi32, #tpu.memory_space<smem>>) -> (i32, i32) {
    %c0_i32 = arith.constant 0 : i32
    %c0_i32_0 = arith.constant 0 : i32
    %c0_i32_1 = arith.constant 0 : i32
    return %c0_i32, %c0_i32_0 : i32, i32
  }
  func.func @transform_3(%arg0: i32, %arg1: memref<8xi32, #tpu.memory_space<smem>>) -> (i32, i32, i32) {
    %c0_i32 = arith.constant 0 : i32
    %c0_i32_0 = arith.constant 0 : i32
    %c0_i32_1 = arith.constant 0 : i32
    %c0_i32_2 = arith.constant 0 : i32
    return %c0_i32, %c0_i32_0, %c0_i32_1 : i32, i32, i32
  }
  func.func @transform_4(%arg0: i32, %arg1: memref<8xi32, #tpu.memory_space<smem>>) -> (i32, i32, i32) {
    %c0_i32 = arith.constant 0 : i32
    %c0_i32_0 = arith.constant 0 : i32
    %c0_i32_1 = arith.constant 0 : i32
    %c0_i32_2 = arith.constant 0 : i32
    return %c0_i32, %c0_i32_0, %c0_i32_1 : i32, i32, i32
  }
  func.func @transform_5(%arg0: i32, %arg1: memref<8xi32, #tpu.memory_space<smem>>) -> (i32, i32, i32) {
    %c0_i32 = arith.constant 0 : i32
    %c0_i32_0 = arith.constant 0 : i32
    %c0_i32_1 = arith.constant 0 : i32
    %c0_i32_2 = arith.constant 0 : i32
    return %c0_i32, %c0_i32_0, %c0_i32_1 : i32, i32, i32
  }
  func.func @transform_6(%arg0: i32, %arg1: memref<8xi32, #tpu.memory_space<smem>>) -> (i32, i32, i32) {
    %c0_i32 = arith.constant 0 : i32
    %c0_i32_0 = arith.constant 0 : i32
    %c0_i32_1 = arith.constant 0 : i32
    %c0_i32_2 = arith.constant 0 : i32
    return %c0_i32, %c0_i32_0, %c0_i32_1 : i32, i32, i32
  }
  func.func @transform_7(%arg0: i32, %arg1: memref<8xi32, #tpu.memory_space<smem>>) -> (i32, i32) {
    %c0_i32 = arith.constant 0 : i32
    %c0_i32_0 = arith.constant 0 : i32
    %c0_i32_1 = arith.constant 0 : i32
    return %c0_i32, %c0_i32_0 : i32, i32
  }
  func.func @transform_8(%arg0: i32, %arg1: memref<8xi32, #tpu.memory_space<smem>>) -> (i32, i32) {
    %c0_i32 = arith.constant 0 : i32
    %c0_i32_0 = arith.constant 0 : i32
    %c0_i32_1 = arith.constant 0 : i32
    return %c0_i32, %c0_i32_0 : i32, i32
  }
  func.func @transform_9(%arg0: i32, %arg1: memref<8xi32, #tpu.memory_space<smem>>) -> (i32, i32, i32) {
    %c0_i32 = arith.constant 0 : i32
    %c0_i32_0 = arith.constant 0 : i32
    %c0_i32_1 = arith.constant 0 : i32
    return %arg0, %c0_i32, %c0_i32_0 : i32, i32, i32
  }
  func.func @transform_10(%arg0: i32, %arg1: memref<8xi32, #tpu.memory_space<smem>>) -> (i32, i32) {
    %c0_i32 = arith.constant 0 : i32
    %c0_i32_0 = arith.constant 0 : i32
    %c0_i32_1 = arith.constant 0 : i32
    return %c0_i32, %c0_i32_0 : i32, i32
  }
}

</mosaic_0001>

<bundles_post_ra>
// kernel: tpu_custom_call.1
= control target key start
LH: loop header
LB: loop body
LE: loop exit
PB: predicated region body
PF: predicated region fallthrough
CT: control target
= control target key end

     0   :  { %s1795_s0 = inlined_call_operand.vmem [shape: s32[8], index: 0, kind: input, shape index: {}]   ;;  %s1796_s1 = inlined_call_operand.vmem [shape: s32[8,8,1], index: 1, kind: input, shape index: {}]   ;;  %s1797_s2 = inlined_call_operand.vmem [shape: f32[8,32], index: 2, kind: input, shape index: {}]   ;;  %s1798_s3 = inlined_call_operand.vmem [shape: bf16[128,32], index: 3, kind: input, shape index: {}]   ;;  %s1799_s4 = inlined_call_operand.vmem [shape: bf16[3,32,32], index: 4, kind: input, shape index: {}]   ;;  %s1800_s5 = inlined_call_operand.vmem [shape: bf16[3,32,32], index: 5, kind: input, shape index: {}]   ;;  %s1801_s6 = inlined_call_operand.vmem [shape: f32[3,1,32], index: 6, kind: input, shape index: {}]   ;;  %s1802_s7 = inlined_call_operand.vmem [shape: f32[3,1,32], index: 7, kind: input, shape index: {}]   ;;  %s1803_s8 = inlined_call_operand.vmem [shape: bf16[32,128], index: 8, kind: input, shape index: {}]   ;;  %s1804_s9 = inlined_call_operand.vmem [shape: f32[1,128], index: 9, kind: input, shape index: {}]   ;;  %s1805_s10 = inlined_call_operand.hbm [shape: f32[7,8,128], index: 10, kind: output, shape index: {0}]   ;;  %s1806_s11 = inlined_call_operand.hbm [shape: f32[8,32], index: 11, kind: output, shape index: {1}]  }
   0x1   :  { %1809 = sst [smem:[#allocation12_spill]] %s1796_s1  ;;  %s17_s19 = sshll.u32 %s1795_s0, 4  ;;  %s18_s19 = int_to_ptr.vmem [resolvable:$true] %s17_s19 }
   0x2   :  { %1810 = sst [smem:[#allocation13_spill]] %s1797_s2  ;;  %s1360_s20 = scalar_lea.vmem %s18_s19, 16 }
   0x3   :  { %p1361_p0 = scmp.ne.s32.totalorder %s18_s19, %s1360_s20  ;;  %p1365_p1 = scmp.lt.s32.totalorder %s18_s19, %s18_s19 }
   0x4   :  { %p1366_p2 = scmp.lt.s32.totalorder %s1360_s20, %s1360_s20 }
   0x6   :  { %p1367_p3 = por %p1366_p2, %p1365_p1 }
   0x8   :  { %p1368_p4 = pnand %p1367_p3, %p1361_p0 }
   0xa   :  { %1371 = shalt.err (!%p1368_p4)  }
   0xb   :  { %s1464_s21 = smov [#allocation4]  }
   0xc   :  { %20 = dma.vmem_to_smem %s18_s19, 16, %s1464_s21, [#allocation3] }
   0xd   :  { %1438 = dma.done.wait [#allocation3], 16 }
   0xe   :  { %1439 = vsyncadd [#allocation3], 4294967280 }
   0xf   :  { %22 = sfence }
  0x10   :  { %23 = vsyncpa [#allocation6], 0 }
  0x11   :  { %25 = vsyncpa [#allocation6 + $0x1], 0 }
  0x12   :  { %26 = vsyncpa [#allocation8], 0  ;;  %s1534_s22 = smov 0   ;;  %s1536_s23 = smov 0  }
  0x13   :  { %s1538_s0 = smov 0   ;;  %s1540_s24 = smov 0  }
  0x14 LB: > { %s1555_s25 = sadd.s32 4294967295, %s1462_s24   ;;  %s1090_s26 = sadd.s32 4294967294, %s1462_s24   ;;  %s1462_s24 = sphi %s1540_s24, %s1821_s24   ;;  %s1458_s0 = sphi %s1538_s0, %s1820_s0   ;;  %s1454_s23 = sphi %s1536_s23, %s1819_s23   ;;  %s1450_s22 = sphi %s1534_s22, %s1818_s22  }
  0x15   : > { %s1559_s27 = sadd.s32 1, %s1462_s24   ;;  %s233_s28 = sadd.s32 1, %s1458_s0 }
  0x16   : > { %s230_s29 = ssub.s32 %s1462_s24, %s1559_s27  ;;  %p243_p5 = scmp.ne.s32.totalorder %s1458_s0, %s1454_s23 }
  0x17   : > { %p231_p6 = scmp.eq.s32.totalorder %s230_s29, 0  ;;  %p1808_p7 = scmp.eq.s32.totalorder %s1555_s25, 6 }
  0x18   : > { %p249_p8 = scmp.ne.s32.totalorder %s1454_s23, %s1450_s22  ;;  %p250_p9 = scmp.eq.s32.totalorder %s1090_s26, 6 }
  0x19   : > { %s1570_s30 = scalar_select %p231_p6, %s1458_s0, %s233_s28  }
  0x1a   : > { %p1574_p10 = por %p1808_p7, %p243_p5  ;;  %p1578_p11 = por %p250_p9, %p249_p8 }
  0x1b   : > { %p1093_p12 = scmp.ge.s32.totalorder %s1462_s24, 1  ;;  %p320_p13 = scmp.lt.s32.totalorder %s1462_s24, 8 }
  0x1d   : > { %p321_p0 = pnand %p1093_p12, %p320_p13 }
  0x1e   : > { %s1807_s14 = sand.u32 (!%p321_p0), 1, %s1454_s23   ;;  %p357_p1 = scmp.lt.s32.totalorder (!%p321_p0), %s1555_s25, 7 }
  0x1f   : > { %324 = sbr.rel (%p321_p0) target bundleno = 1168 (0x490), region = 56  ;;  %s1588_s15 = sshll.u32 (!%p321_p0), %s1807_s14, 3 }
  0x20   : > { %p362_p2 = scmp.eq.s32.totalorder (!%p321_p0), %s1555_s25, 0  ;;  %s1813_s1 = sld [smem:[#allocation12_spill]] (!%p321_p0) }
  0x21   : > { %s354_s21 = scalar_lea.vmem (!%p321_p0), [#allocation5], %s1588_s15  ;;  %p1096_p3 = scmp.ne.s32.totalorder (!%p321_p0), %s1555_s25, 0 }
  0x24   : > { %s358_s16 = scalar_select %p357_p1, %s1555_s25, 7 }
  0x25   : > { %365 = sbr.rel (%p1096_p3) target bundleno = 45 (0x2d), region = 60  ;;  %s1814_s2 = sld [smem:[#allocation13_spill]] (!%p1096_p3) }
  0x26   : > { %s1095_s17 = sshll.u32 %s358_s16, 3 }
  0x27   : > { %s360_s20 = scalar_lea.vmem %s1813_s1, %s1095_s17 }
  0x2a   : > { %vm367_vm0 = vcmask 261120  }
  0x2b   : > { %v366_v0 = vld [vmem:[%s1814_s2] sm:$0xff] }
  0x2c   : > { %368 = vst.msk [vmem:[#allocation7] sm:$0xff] %vm367_vm0, %v366_v0 }
  0x2d PF: > { %s370_s29 = sld [smem:[#allocation4 + %s1555_s25]]  ;;  %v1324_v1 = vld [vmem:[%s1798_s3 + $0x38] sm:$0xff]   ;;  %v1465_v2 = vmov 0   ;;  %v1466_v3 = vmov 0.0   ;;  %v1325_v4 = vld [vmem:[%s1798_s3 + $0x30] sm:$0xff]   ;;  %v1326_v5 = vld [vmem:[%s1798_s3 + $0x28] sm:$0xff]   ;;  %v378_v17 = vlaneseq }
  0x2e   : > { %1323 = vset.pattern.permute.xlu0 %v1465_v2  ;;  %1194 = vmatprep.subr.bf16.mxu0 %v1466_v3  ;;  %v1327_v6 = vld [vmem:[%s1798_s3 + $0x20] sm:$0xff]   ;;  %vm1467_vm1 = vmmov 0   ;;  %v1328_v10 = vld [vmem:[%s1798_s3 + $0x18] sm:$0xff]   ;;  %v1332_v11 = vld [vmem:[%s1799_s4 + $0x8] sm:$0xff]   ;;  %v1468_v21 = vmov 1.0|1.0  }
  0x2f   : > { %1195 = vmatpush3.bf16.msra.mxu0 %v1324_v1  ;;  %1214 = vmatprep.subr.bf16.mxu1 %v1466_v3  ;;  %v369_v7 = vld [vmem:[%s360_s20] sm:$0xff]  ;;  %v1329_v14 = vld [vmem:[%s1798_s3 + $0x10] sm:$0xff]   ;;  %v1330_v15 = vld [vmem:[%s1798_s3 + $0x8] sm:$0xff]   ;;  %v1649_v18 = vand.u32 127, %v378_v17  ;;  %vm517_vm5 = vcmask 261120   ;;  %s1469_s26 = smov [#allocation7]  }
  0x30   : > { %1196 = vmatprep.subr.bf16.mxu0 %v1466_v3  ;;  %v373_v8 = vld [vmem:[#allocation2] sm:$0xff]  ;;  %1210 = vmatprep.mubr.msk.bf16.mxu0 %vm1467_vm1, %v1466_v3  ;;  %v1333_v20 = vld [vmem:[%s1799_s4 + $0x28] sm:$0xff]   ;;  %v1338_v32 = vld [vmem:[%s1799_s4 + $0x18] sm:$0xff]   ;;  %s1020_s14 = sshll.u32 %s1469_s26, 4  ;;  %s1021_s14 = int_to_ptr.vmem [resolvable:$true] %s1020_s14 }
  0x31   : > { %1218 = vmatprep.mubr.msk.bf16.mxu1 %vm1467_vm1, %v1466_v3  ;;  %v1334_v13 = vld [vmem:[%s1799_s4] sm:$0xff]   ;;  %1215 = vmatpush3.bf16.msra.mxu1 %v1332_v11  ;;  %v1336_v24 = vld [vmem:[%s1800_s5 + $0x8] sm:$0xff]   ;;  %v1339_v33 = vld [vmem:[%s1799_s4 + $0x10] sm:$0xff]   ;;  %s1372_s28 = scalar_lea.vmem %s1021_s14, 128  ;;  %p1379_p12 = scmp.lt.s32.totalorder %s1021_s14, %s1021_s14 }
  0x32   : > { %1216 = vmatprep.subr.bf16.mxu1 %v1466_v3  ;;  %v1331_v16 = vld [vmem:[%s1798_s3] sm:$0xff]   ;;  %v1340_v34 = vld [vmem:[%s1800_s5 + $0x18] sm:$0xff]   ;;  %v1341_v35 = vld [vmem:[%s1800_s5 + $0x10] sm:$0xff]   ;;  %p1373_p6 = scmp.ne.s32.totalorder %s1021_s14, %s1372_s28  ;;  %p1380_p13 = scmp.lt.s32.totalorder %s1372_s28, %s1372_s28 }
  0x33   : > { %p371_p4 = scmp.ne.s32.totalorder %s370_s29, 0  ;;  %1197 = vmatpush3.bf16.msra.mxu0 %v1325_v4  ;;  %v1335_v22 = vld [vmem:[%s1799_s4 + $0x20] sm:$0xff]   ;;  %v1672_v29 = vld [vmem:[#allocation7] sm:$0xff]  ;;  %v1342_v36 = vld [vmem:[%s1800_s5 + $0x28] sm:$0xff]  }
  0x34   : > { %1198 = vmatprep.subr.bf16.mxu0 %v1466_v3  ;;  %v1337_v28 = vld [vmem:[%s1800_s5] sm:$0xff]   ;;  %v493_v31 = vpack.c.bf16 %v1672_v29, %v1672_v29  ;;  %v1344_v38 = vld [vmem:[%s1803_s8 + $0x8] sm:$0xff]   ;;  %p1374_p8 = pnand %p1373_p6, %p1808_p7  ;;  %p1381_p0 = por %p1380_p13, %p1379_p12 }
  0x35   : > { %p372_p5 = por %p371_p4, %p362_p2  ;;  %1217 = vmatpush3.bf16.msra.mxu1 %v1334_v13  ;;  %v1343_v37 = vld [vmem:[%s1800_s5 + $0x20] sm:$0xff]  }
  0x36   : > { %1222 = vmatprep.subr.bf16.mxu1 %v1466_v3  ;;  %v1345_v39 = vld [vmem:[%s1803_s8] sm:$0xff]   ;;  %p1375_p9 = pneg %p1374_p8 }
  0x37   : > { %s374_s16 = scalar_select %p372_p5, 1, 0  ;;  %1199 = vmatpush3.bf16.msra.mxu0 %v1326_v5  ;;  %v1108_v46 = vld [vmem:[%s1801_s6] ss:$0 sm:$0xff]  ;;  %v1121_v61 = vld [vmem:[%s1801_s6 + $0x1] ss:$0 sm:$0xff] }
  0x38   : > { %1200 = vmatprep.subr.bf16.mxu0 %v1466_v3  ;;  %v1112_v49 = vld [vmem:[%s1802_s7] ss:$0 sm:$0xff]  ;;  %v1130_v63 = vld [vmem:[%s1802_s7 + $0x1] ss:$0 sm:$0xff]  ;;  %v1148_v13 = vld [vmem:[%s1802_s7 + $0x2] ss:$0 sm:$0xff]  ;;  %p1382_p1 = pnand %p1381_p0, %p1375_p9 }
  0x39   : > { %v375_v9 = vstv %s374_s16 }
  0x3a   : > { %vm376_vm2 = vcmp.eq.s32.totalorder %v375_v9, 1 }
  0x3b   : > { %v377_v12 = vsel %vm376_vm2, %v369_v7, %v373_v8  ;;  %1201 = vmatpush3.bf16.msra.mxu0 %v1327_v6 }
  0x3c   : > { %381 = vperm.xlu0 %1323, %v377_v12   ;;  %1202 = vmatprep.subr.bf16.mxu0 %v1466_v3 }
  0x3f   : > { %1203 = vmatpush3.bf16.msra.mxu0 %v1328_v10 }
  0x40   : > { %1204 = vmatprep.subr.bf16.mxu0 %v1466_v3 }
  0x43   : > { %1205 = vmatpush3.bf16.msra.mxu0 %v1329_v14 }
  0x44   : > { %1206 = vmatprep.subr.bf16.mxu0 %v1466_v3 }
  0x47   : > { %1207 = vmatpush3.bf16.msra.mxu0 %v1330_v15 }
  0x48   : > { %1208 = vmatprep.subr.bf16.mxu0 %v1466_v3 }
  0x4b   : > { %1209 = vmatpush3.bf16.msra.mxu0 %v1331_v16  ;;  %v1139_v16 = vld [vmem:[%s1801_s6 + $0x2] ss:$0 sm:$0xff] }
  0x4c   : > { %1246 = vmatprep.subr.bf16.mxu0 %v1466_v3 }
  0xb7   : > { %v382_v19 = vpop.permute.xlu0 %381 }
  0xb8   : > { %vm383_vm3 = vcmp.eq.s32.totalorder %v1649_v18, %v382_v19 }
  0xb9   : > { %vm1106_vm4 = vmpackc.low %vm383_vm3, %vm383_vm3 }
  0xba   : > { %1211 = vmatmul.mubr.msk.bf16.vlgmr.msra.gmra.mxu0 %vm1106_vm4, %v1468_v21 }
  0xbb   : > { %1247 = vmatpush3.bf16.msra.mxu0 %v1333_v20  ;;  %1250 = vmatprep.mubr.msk.bf16.mxu0 %vm1467_vm1, %v1466_v3 }
  0xbc   : > { %1248 = vmatprep.subr.bf16.mxu0 %v1466_v3 }
  0xbf   : > { %1249 = vmatpush3.bf16.msra.mxu0 %v1335_v22 }
  0xc0   : > { %1262 = vmatprep.subr.bf16.mxu0 %v1466_v3 }
 0x17a   : > { %v485_v23 = vpop.f32.mrf.mxu0 }
 0x17b   : > { %v492_v25 = vpack.c.bf16 %v485_v23, %v485_v23 }
 0x17c   : > { %v1212_v26 = vpop.f32.mrf.mxu0 }
 0x17d   : > { %1219 = vmatmul.mubr.msk.bf16.vlgmr.msra.gmra.mxu1 %vm517_vm5, %v492_v25  ;;  %1251 = vmatmul.mubr.msk.bf16.vlgmr.msra.gmra.mxu0 %vm517_vm5, %v492_v25 }
 0x17e   : > { %1223 = vmatpush3.bf16.msra.mxu1 %v1336_v24  ;;  %v488_v27 = vpop.f32.mrf.mxu0  ;;  %1226 = vmatprep.mubr.msk.bf16.mxu1 %vm1467_vm1, %v1466_v3 }
 0x17f   : > { %1224 = vmatprep.subr.bf16.mxu1 %v1466_v3  ;;  %1266 = vmatprep.mubr.msk.bf16.mxu0 %vm1467_vm1, %v1466_v3 }
 0x180   : > { %v1213_v30 = vpop.f32.mrf.mxu0  ;;  %1263 = vmatpush3.bf16.msra.mxu0 %v1344_v38 }
 0x181   : > { %1264 = vmatprep.subr.bf16.mxu0 %v1466_v3 }
 0x182   : > { %1225 = vmatpush3.bf16.msra.mxu1 %v1337_v28 }
 0x183   : > { %1230 = vmatprep.subr.bf16.mxu1 %v1466_v3 }
 0x184   : > { %1265 = vmatpush3.bf16.msra.mxu0 %v1345_v39 }
 0x185   : > { %1227 = vmatmul.mubr.msk.bf16.vlgmr.msra.gmra.mxu1 %vm517_vm5, %v493_v31 }
 0x186   : > { %1231 = vmatpush3.bf16.msra.mxu1 %v1338_v32  ;;  %1234 = vmatprep.mubr.msk.bf16.mxu1 %vm1467_vm1, %v1466_v3  ;;  %v1154_v32 = vld [vmem:[%s1804_s9] ss:$0 sm:$0xff] }
 0x187   : > { %1232 = vmatprep.subr.bf16.mxu1 %v1466_v3 }
 0x18a   : > { %1233 = vmatpush3.bf16.msra.mxu1 %v1339_v33 }
 0x18b   : > { %1238 = vmatprep.subr.bf16.mxu1 %v1466_v3 }
 0x18d   : > { %1235 = vmatmul.mubr.msk.bf16.vlgmr.msra.gmra.mxu1 %vm517_vm5, %v492_v25 }
 0x18e   : > { %1239 = vmatpush3.bf16.msra.mxu1 %v1340_v34  ;;  %1242 = vmatprep.mubr.msk.bf16.mxu1 %vm1467_vm1, %v1466_v3 }
 0x18f   : > { %1240 = vmatprep.subr.bf16.mxu1 %v1466_v3 }
 0x192   : > { %1241 = vmatpush3.bf16.msra.mxu1 %v1341_v35 }
 0x193   : > { %1254 = vmatprep.subr.bf16.mxu1 %v1466_v3 }
 0x195   : > { %1243 = vmatmul.mubr.msk.bf16.vlgmr.msra.gmra.mxu1 %vm517_vm5, %v493_v31 }
 0x196   : > { %1255 = vmatpush3.bf16.msra.mxu1 %v1342_v36  ;;  %1258 = vmatprep.mubr.msk.bf16.mxu1 %vm1467_vm1, %v1466_v3 }
 0x197   : > { %1256 = vmatprep.subr.bf16.mxu1 %v1466_v3 }
 0x19a   : > { %1257 = vmatpush3.bf16.msra.mxu1 %v1343_v37 }
 0x19d   : > { %1259 = vmatmul.mubr.msk.bf16.vlgmr.msra.gmra.mxu1 %vm517_vm5, %v493_v31 }
 0x23d   : > { %v555_v40 = vpop.f32.mrf.mxu1  ;;  %v816_v41 = vpop.f32.mrf.mxu0 }
 0x23e   : > { %v556_v51 = vadd.f32 %v1108_v46, %v555_v40  ;;  %v817_v20 = vadd.f32 %v1139_v16, %v816_v41  ;;  %v988_v41 = vcvt.s32.f32 %v1649_v18 }
 0x23f   : > { %v1220_v42 = vpop.f32.mrf.mxu1  ;;  %v1252_v43 = vpop.f32.mrf.mxu0 }
 0x241   : > { %v558_v44 = vpop.f32.mrf.mxu1  ;;  %v819_v45 = vpop.f32.mrf.mxu0 }
 0x243   : > { %v1221_v47 = vpop.f32.mrf.mxu1  ;;  %v1253_v48 = vpop.f32.mrf.mxu0 }
 0x245   : > { %v621_v50 = vpop.f32.mrf.mxu1 }
 0x246   : > { %v622_v52 = vadd.f32 %v1112_v49, %v621_v50 }
 0x247   : > { %v1228_v53 = vpop.f32.mrf.mxu1 }
 0x248   : > { %v887_v54 = vadd.f32 %v622_v52, %v556_v51 }
 0x249   : > { %v624_v55 = vpop.f32.mrf.mxu1 }
 0x24a   : > { %v1152_v56 = vmul.f32 -1.442695, %v887_v54 }
 0x24b   : > { %v1229_v57 = vpop.f32.mrf.mxu1 }
 0x24c   : > { %1346 = vpow2.f32 %v1152_v56 }
 0x24d   : > { %v686_v58 = vpop.f32.mrf.mxu1 }
 0x24e   : > { %v687_v1 = vadd.f32 %v1121_v61, %v686_v58 }
 0x24f   : > { %v1236_v59 = vpop.f32.mrf.mxu1 }
 0x251   : > { %v689_v60 = vpop.f32.mrf.mxu1 }
 0x253   : > { %v1237_v62 = vpop.f32.mrf.mxu1 }
 0x255   : > { %v751_v0 = vpop.f32.mrf.mxu1 }
 0x256   : > { %v752_v2 = vadd.f32 %v1130_v63, %v751_v0 }
 0x257   : > { %v1244_v3 = vpop.f32.mrf.mxu1 }
 0x258   : > { %v894_v4 = vadd.f32 %v752_v2, %v687_v1 }
 0x259   : > { %v1347_v5 = vpop.eup %1346  ;;  %v754_v6 = vpop.f32.mrf.mxu1 }
 0x25a   : > { %v891_v7 = vadd.f32 1.0, %v1347_v5  ;;  %v1153_v8 = vmul.f32 -1.442695, %v894_v4 }
 0x25b   : > { %v1245_v9 = vpop.f32.mrf.mxu1 }
 0x25c   : > { %1348 = vrcp.f32 %v891_v7 }
 0x25d   : > { %1350 = vpow2.f32 %v1153_v8  ;;  %v881_v10 = vpop.f32.mrf.mxu1 }
 0x25e   : > { %v882_v15 = vadd.f32 %v1148_v13, %v881_v10 }
 0x25f   : > { %v1260_v11 = vpop.f32.mrf.mxu1 }
 0x261   : > { %v884_v12 = vpop.f32.mrf.mxu1 }
 0x263   : > { %v1261_v14 = vpop.f32.mrf.mxu1 }
 0x269   : > { %v1349_v17 = vpop.eup %1348 }
 0x26a   : > { %v1351_v19 = vpop.eup %1350  ;;  %v901_v21 = vmul.f32 %v1349_v17, %v882_v15 }
 0x26b   : > { %v898_v22 = vadd.f32 1.0, %v1351_v19 }
 0x26c   : > { %v902_v23 = vadd.f32 %v901_v21, %v817_v20 }
 0x26d   : > { %1352 = vrcp.f32 %v898_v22 }
 0x26e   : > { %1354 = vtanh.f32 %v902_v23 }
 0x27a   : > { %v1353_v24 = vpop.eup %1352 }
 0x27b   : > { %v1355_v25 = vpop.eup %1354  ;;  %v904_v26 = vsub.f32 1.0, %v1353_v24  ;;  %v906_v28 = vmul.f32 %v1353_v24, %v1672_v29 }
 0x27d   : > { %v905_v27 = vmul.f32 %v1355_v25, %v904_v26 }
 0x27f   : > { %v907_v30 = vadd.f32 %v906_v28, %v905_v27 }
 0x281   : > { %v909_v31 = vpack.c.bf16 %v907_v30, %v907_v30  ;;  %908 = vst.msk [vmem:[#allocation7] sm:$0xff] %vm517_vm5, %v907_v30 }
 0x283   : > { %1267 = vmatmul.mubr.msk.bf16.vlgmr.msra.gmra.mxu0 %vm517_vm5, %v909_v31 }
 0x343   : > { %v970_v33 = vpop.f32.mrf.mxu0 }
 0x344   : > { %v971_v34 = vadd.f32 %v1154_v32, %v970_v33 }
 0x345   : > { %v1268_v35 = vpop.f32.mrf.mxu0 }
 0x346   : > { %976 = vmax.xlane.f32.xlu0 %v971_v34 }
 0x347   : > { %v973_v36 = vpop.f32.mrf.mxu0 }
 0x349   : > { %v1269_v37 = vpop.f32.mrf.mxu0 }
 0x3cf   : > { %v977_v38 = vpop.xlane.xlu0 %976 }
 0x3d0   : > { %v978_v39 = vsub.f32 %v971_v34, %v977_v38  ;;  %vm987_vm6 = vcmp.eq.f32.partialorder %v971_v34, %v977_v38 }
 0x3d1   : > { %v989_v42 = vsel %vm987_vm6, %v988_v41, 128.0 }
 0x3d2   : > { %v979_v29 = vmul.f32 1.442695, %v978_v39 }
 0x3d4   : > { %1356 = vpow2.f32 %v979_v29 }
 0x3e1   : > { %v1357_v40 = vpop.eup %1356 }
 0x3e2   : > { %981 = vadd.xlane.f32.xlu1 %v1357_v40 }
 0x3e6   : > { %990 = vmin.xlane.f32.xlu1 %v989_v42 }
 0x3e7   : > { %1385 = shalt.err (!%p1382_p1)
}
 0x3e8   : > { %1274 = dma.vmem_to_hbm [thread:$0]  (%p1808_p7), %s1021_s14, 128, %s1806_s11, [#allocation8]   ;;  %vm993_vm7 = vcmask 7168  }
 0x3e9   : > { %s1159_s17 = sshll.u32 %s1555_s25, 7  ;;  %s1009_s18 = sshll.u32 %s354_s21, 4  ;;  %s1010_s18 = int_to_ptr.vmem [resolvable:$true] %s1009_s18 }
 0x3ea   : > { %s1007_s26 = scalar_lea.hbm %s1805_s10, %s1159_s17  ;;  %s1815_s14 = sand.u32 1, %s1454_s23  }
 0x3eb   : > { %s996_s28 = scalar_lea.sflag [#allocation6], %s1815_s14  ;;  %s1396_s16 = scalar_lea.vmem %s1010_s18, 128 }
 0x3ec   : > { %p1397_p2 = scmp.ne.s32.totalorder %s1010_s18, %s1396_s16  ;;  %s1470_s29 = smov [#allocation5]  }
 0x3ed   : > { %s1400_s1 = sshll.u32 %s1470_s29, 4  ;;  %s1401_s1 = int_to_ptr.vmem [resolvable:$false] %s1400_s1 }
 0x3ee   : > { %p1398_p3 = pnand %p1397_p2, %p1574_p10  ;;  %s1402_s2 = scalar_lea.vmem %s1401_s1, 256 }
 0x3ef   : > { %p1403_p5 = scmp.lt.s32.totalorder %s1010_s18, %s1401_s1  ;;  %p1404_p6 = scmp.lt.s32.totalorder %s1402_s2, %s1396_s16 }
 0x3f0   : > { %p1399_p4 = pneg %p1398_p3 }
 0x3f1   : > { %p1405_p8 = por %p1404_p6, %p1403_p5 }
 0x3f3   : > { %p1406_p9 = pnand %p1405_p8, %p1399_p4 }
 0x46b   : > { %v982_v18 = vpop.xlane.xlu1 %981 }
 0x46c   : > { %1358 = vlog2.f32 %v982_v18 }
 0x46f   : > { %v991_v43 = vpop.xlane.xlu1 %990 }
 0x470   : > { %v1270_v44 = vtrunc.f32 %v991_v43 }
 0x472   : > { %v1271_v45 = vcvt.f32.s32 %v1270_v44 }
 0x474   : > { %994 = vst.msk [vmem:[#allocation2] sm:$0xff] %vm993_vm7, %v1271_v45 }
 0x479   : > { %v1359_v46 = vpop.eup %1358 }
 0x47a   : > { %v984_v47 = vmul.f32 0.6931472, %v1359_v46 }
 0x47c   : > { %v985_v48 = vsub.f32 %v978_v39, %v984_v47 }
 0x47e   : > { %986 = vst [vmem:[%s354_s21] sm:$0xff] %v985_v48 }
 0x47f   : > { %1409 = shalt.err (!%p1406_p9)
}
 0x480   : > { %s1410_s17 = scalar_lea.hbm %s1007_s26, 128  ;;  %s1414_s20 = scalar_lea.hbm %s1805_s10, 896 }
 0x481   : > { %p1411_p12 = scmp.ne.s32.totalorder %s1007_s26, %s1410_s17  ;;  %p1415_p1 = scmp.lt.s32.totalorder %s1007_s26, %s1805_s10 }
 0x482   : > { %p1416_p2 = scmp.lt.s32.totalorder %s1414_s20, %s1410_s17 }
 0x483   : > { %p1412_p13 = pnand %p1411_p12, %p1574_p10 }
 0x484   : > { %p1417_p3 = por %p1416_p2, %p1415_p1 }
 0x485   : > { %p1413_p0 = pneg %p1412_p13 }
 0x487   : > { %p1418_p7 = pnand %p1417_p3, %p1413_p0 }
 0x489   : > { %1421 = shalt.err (!%p1418_p7)
}
 0x48a   : > { %1272 = dma.vmem_to_hbm [thread:$0]  (%p1574_p10), %s1010_s18, 128, %s1007_s26, %s996_s28  }
 0x48b   : > { %p1816_p4 = scmp.eq.s32.totalorder %s1555_s25, 6 }
 0x48d   : > { %1441 = dma.done.wait (%p1816_p4), [#allocation8], 128   ;;  %p1817_p5 = pmov %p1816_p4 }
 0x48f   : > { %1443 = vsyncadd (%p1817_p5), [#allocation8], 4294967168 }
 0x490 PF: > { %p1284_p6 = scmp.ge.s32.totalorder %s1462_s24, 2  ;;  %s1036_s1 = sand.u32 1, %s1450_s22  }
 0x491   : > { %s1037_s2 = scalar_lea.sflag [#allocation6], %s1036_s1 }
 0x492   : > { %p1279_p8 = pnand %p1284_p6, %p1578_p11 }
 0x494   : > { %p1280_p9 = pneg %p1279_p8 }
 0x496   : > { %1445 = dma.done.wait (%p1280_p9), %s1037_s2, 128  }
 0x497   : > { %1447 = vsyncadd (%p1280_p9), %s1037_s2, 4294967168  ;;  %p29_p7 = scmp.ge.s32.totalorder %s1559_s27, 9   ;;  %s1818_s22 = smov %s1454_s23 }
 0x498   : > { %s1819_s23 = smov %s1458_s0  ;;  %s1820_s0 = smov %s1570_s30 }
 0x499   : > { %s1821_s24 = smov %s1559_s27  ;;  %31 = sbr.rel (!%p29_p7) target bundleno = 20 (0x14), region = 111 }
 0x49e   :  { %1042 = vsyncpa [#allocation6], 1 }
 0x49f   :  { %1044 = vsyncpa [#allocation6 + $0x1], 1 }
 0x4a0   :  { %1045 = vsyncpa [#allocation8], 1 }

</bundles_post_ra>
